<compile_context>
chip_gen: v5e
topology: v5e:2x2
jax: 0.10.0
libtpu: 0.0.40
codegen_flags: <defaults>
</compile_context>

<pallas_src>
import functools
import math

import jax
import jax.numpy as jnp
from jax.experimental import pallas as pl
from jax.experimental.pallas import tpu as pltpu

EPS = 1e-6


def _layer_norm_kernel(x_ref, gamma_ref, beta_ref, o_ref, *, d_true):
    # x_ref: (br, Dp); gamma_ref/beta_ref: (1, Dp) f32 (zero-padded past d_true).
    x = x_ref[...].astype(jnp.float32)
    dp = x.shape[-1]

    # Mean over the true feature count (zero padding contributes nothing to the sum).
    mean = jnp.sum(x, axis=-1, keepdims=True) / d_true          # (rows, 1)
    xc = x - mean                                               # (rows, Dp)

    if dp == d_true:
        sq = xc * xc
    else:
        # Padded lanes hold -mean after centering; mask them out of the variance.
        lane = jax.lax.broadcasted_iota(jnp.int32, x.shape, dimension=x.ndim - 1)
        sq = jnp.where(lane < d_true, xc * xc, 0.0)

    # PyTorch torch.Tensor.std is unbiased (Bessel, / (D - 1)).
    var_unbiased = jnp.sum(sq, axis=-1, keepdims=True) / (d_true - 1)
    std = jnp.sqrt(var_unbiased)                                # (rows, 1)
    # eps added to std (not inside sqrt), matching the module.  Exact reciprocal
    # on the narrow (rows, 1) column; full-width op becomes a multiply.
    inv = pl.reciprocal(std + EPS, approx=False)                # (rows, 1)

    o_ref[...] = ((xc * inv) * gamma_ref[...] + beta_ref[...]).astype(o_ref.dtype)


def _round_up(n, m):
    return ((n + m - 1) // m) * m


def _vmem_budget_bytes():
    """Per-generation VMEM budget for the kernel's tiles (conservative)."""
    try:
        cap = pltpu.get_tpu_info().vmem_capacity_bytes
    except Exception:
        cap = 64 * 1024 * 1024  # assume the smallest (v7x) if query unavailable
    # ~70% of physical, never above 100 MiB: ~45 MiB on v7x, ~90 MiB on v5e/v6e.
    return min(int(cap * 0.7), 100 * 1024 * 1024)


def layer_norm(x, gamma, beta, *, target_tile_bytes=4 * 1024 * 1024, min_grid_steps=4):
    """LayerNorm over the last dim of x (any leading shape). gamma/beta: (D,)."""
    D = x.shape[-1]
    assert D >= 2, "unbiased std requires at least 2 features"
    lead = x.shape[:-1]
    R = math.prod(lead) if lead else 1

    # Flatten to (R, D) in the wrapper (layout plumbing, not kernel work).
    x2 = x.reshape(R, D)

    # Lane-dense feature dim: pad D up to a multiple of 128 if needed.
    if D % 128 == 0:
        Dp = D
        xp = x2
        g = gamma.astype(jnp.float32).reshape(1, D)
        b = beta.astype(jnp.float32).reshape(1, D)
    else:
        Dp = _round_up(D, 128)
        xp = jnp.pad(x2, ((0, 0), (0, Dp - D)))
        g = jnp.pad(gamma.astype(jnp.float32), (0, Dp - D)).reshape(1, Dp)
        b = jnp.pad(beta.astype(jnp.float32), (0, Dp - D)).reshape(1, Dp)

    bytes_per_row = Dp * 4  # kernel computes in f32

    # Row tile: aim for ~target_tile_bytes per input tile ...
    br = max(8, _round_up(target_tile_bytes // bytes_per_row, 8))
    # ... capped so double-buffered (in + out) tiles fit the VMEM budget ...
    budget = _vmem_budget_bytes()
    max_br_vmem = max(8, ((budget // (4 * bytes_per_row)) // 8) * 8)
    br = min(br, max_br_vmem)
    # ... and keep >= min_grid_steps grid steps when the input allows it
    # (pipelining + both TensorCores on v7x via the "parallel" axis).
    if R > min_grid_steps * 8:
        br = min(br, _round_up(pl.cdiv(R, min_grid_steps), 8))
    br = max(8, min(br, _round_up(R, 8)))

    grid = (pl.cdiv(R, br),)  # ragged last block clipped by Pallas (no jnp.pad on rows)

    # VMEM limit derived from the actual footprint: 2 buffers x (in + out) tiles
    # + double-buffered gamma/beta + margin, clamped to the per-gen budget.
    tile_bytes = br * bytes_per_row
    footprint = 4 * tile_bytes + 4 * Dp * 4 + (1 << 20)
    vmem_limit = min(budget, max(footprint, 16 * 1024 * 1024))

    kernel = functools.partial(_layer_norm_kernel, d_true=D)

    out = pl.pallas_call(
        kernel,
        out_shape=jax.ShapeDtypeStruct((R, Dp), x.dtype),
        grid=grid,
        in_specs=[
            pl.BlockSpec((br, Dp), lambda i: (i, 0)),
            pl.BlockSpec((1, Dp), lambda i: (0, 0)),
            pl.BlockSpec((1, Dp), lambda i: (0, 0)),
        ],
        out_specs=pl.BlockSpec((br, Dp), lambda i: (i, 0)),
        compiler_params=pltpu.CompilerParams(
            dimension_semantics=("parallel",),
            vmem_limit_bytes=vmem_limit,
        ),
    )(xp, g, b)

    if Dp != D:
        out = out[:, :D]
    return out.reshape(x.shape)


def layer_norm_ref(x, gamma, beta):
    """Pure-JAX reference with identical (PyTorch-module) semantics."""
    D = x.shape[-1]
    xf = x.astype(jnp.float32)
    mean = jnp.mean(xf, axis=-1, keepdims=True)
    xc = xf - mean
    std = jnp.sqrt(jnp.sum(xc * xc, axis=-1, keepdims=True) / (D - 1))
    out = gamma * xc / (std + EPS) + beta
    return out.astype(x.dtype)


if __name__ == "__main__":
    key = jax.random.PRNGKey(0)
    kx, kg, kb, ky = jax.random.split(key, 4)

    # Lane-dense case: D = 256 (multiple of 128), rows = B*T = 512
    # -> 4 pipelined, row-parallel grid steps of 128 rows each.
    B, T, D = 4, 128, 256
    x = jax.random.normal(kx, (B, T, D), dtype=jnp.float32)
    gamma = 1.0 + 0.1 * jax.random.normal(kg, (D,), dtype=jnp.float32)
    beta = 0.1 * jax.random.normal(kb, (D,), dtype=jnp.float32)

    out = layer_norm(x, gamma, beta)
    out = jax.block_until_ready(out)
    ref = layer_norm_ref(x, gamma, beta)
    assert out.shape == x.shape, out.shape
    assert jnp.allclose(out, ref, atol=1e-5, rtol=1e-5), "mismatch vs reference (aligned)"

    # Non-aligned case (odd rows, D=40) exercises the lane-padding + ragged-grid path.
    B2, T2, D2 = 2, 7, 40
    y = jax.random.normal(ky, (B2, T2, D2), dtype=jnp.float32)
    g2 = 1.0 + 0.05 * jax.random.normal(kg, (D2,), dtype=jnp.float32)
    b2 = 0.05 * jax.random.normal(kb, (D2,), dtype=jnp.float32)
    out2 = jax.block_until_ready(layer_norm(y, g2, b2))
    ref2 = layer_norm_ref(y, g2, b2)
    assert out2.shape == y.shape, out2.shape
    assert jnp.allclose(out2, ref2, atol=1e-5, rtol=1e-5), "mismatch vs reference (padded D)"

    print("KERNEL_OK")
</pallas_src>

<mosaic_0001>
module attributes {stable_mosaic.version = 11 : i64} {
  func.func @_layer_norm_kernel(%arg0: i32, %arg1: memref<128x256xf32, #tpu.memory_space<vmem>>, %arg2: memref<1x256xf32, #tpu.memory_space<vmem>>, %arg3: memref<1x256xf32, #tpu.memory_space<vmem>>, %arg4: memref<128x256xf32, #tpu.memory_space<vmem>>) attributes {dimension_semantics = [#tpu.dimension_semantics<parallel>], iteration_bounds = array<i64: 4>, scalar_prefetch = 0 : i64, scratch_operands = 0 : i64, tpu.core_type = #tpu.core_type<tc>, window_params = [{transform_indices = @transform_0, window_bounds = array<i64: 128, 256>}, {pipeline_mode = #tpu.pipeline_mode<synchronous>, transform_indices = @transform_1, window_bounds = array<i64: 1, 256>}, {pipeline_mode = #tpu.pipeline_mode<synchronous>, transform_indices = @transform_2, window_bounds = array<i64: 1, 256>}, {transform_indices = @transform_3, window_bounds = array<i64: 128, 256>}]} {
    %c0 = arith.constant 0 : index
    %c0_0 = arith.constant 0 : index
    %0 = vector.load %arg1[%c0, %c0_0] : memref<128x256xf32, #tpu.memory_space<vmem>>, vector<128x256xf32>
    %cst = arith.constant dense<0.000000e+00> : vector<128xf32>
    %1 = vector.multi_reduction <add>, %0, %cst [1] : vector<128x256xf32> to vector<128xf32>
    %2 = vector.shape_cast %1 : vector<128xf32> to vector<128x1xf32>
    %cst_1 = arith.constant 2.560000e+02 : f32
    %3 = vector.broadcast %cst_1 : f32 to vector<128x1xf32>
    %4 = arith.divf %2, %3 : vector<128x1xf32>
    %5 = vector.broadcast %4 : vector<128x1xf32> to vector<128x256xf32>
    %6 = arith.subf %0, %5 : vector<128x256xf32>
    %7 = arith.mulf %6, %6 : vector<128x256xf32>
    %cst_2 = arith.constant dense<0.000000e+00> : vector<128xf32>
    %8 = vector.multi_reduction <add>, %7, %cst_2 [1] : vector<128x256xf32> to vector<128xf32>
    %9 = vector.shape_cast %8 : vector<128xf32> to vector<128x1xf32>
    %cst_3 = arith.constant 2.550000e+02 : f32
    %10 = vector.broadcast %cst_3 : f32 to vector<128x1xf32>
    %11 = arith.divf %9, %10 : vector<128x1xf32>
    %12 = math.sqrt %11 : vector<128x1xf32>
    %cst_4 = arith.constant 9.99999997E-7 : f32
    %13 = vector.broadcast %cst_4 : f32 to vector<128x1xf32>
    %14 = arith.addf %12, %13 : vector<128x1xf32>
    %15 = tpu.reciprocal %14 : vector<128x1xf32> -> vector<128x1xf32>
    %16 = vector.broadcast %15 : vector<128x1xf32> to vector<128x256xf32>
    %17 = arith.mulf %6, %16 : vector<128x256xf32>
    %c0_5 = arith.constant 0 : index
    %c0_6 = arith.constant 0 : index
    %18 = vector.load %arg2[%c0_5, %c0_6] : memref<1x256xf32, #tpu.memory_space<vmem>>, vector<1x256xf32>
    %19 = vector.broadcast %18 : vector<1x256xf32> to vector<128x256xf32>
    %20 = arith.mulf %17, %19 : vector<128x256xf32>
    %c0_7 = arith.constant 0 : index
    %c0_8 = arith.constant 0 : index
    %21 = vector.load %arg3[%c0_7, %c0_8] : memref<1x256xf32, #tpu.memory_space<vmem>>, vector<1x256xf32>
    %22 = vector.broadcast %21 : vector<1x256xf32> to vector<128x256xf32>
    %23 = arith.addf %20, %22 : vector<128x256xf32>
    %c0_9 = arith.constant 0 : index
    %c0_10 = arith.constant 0 : index
    %24 = vector.load %arg4[%c0_9, %c0_10] : memref<128x256xf32, #tpu.memory_space<vmem>>, vector<128x256xf32>
    tpu.vector_store %arg4[%c0_9, %c0_10], %23 {strides = array<i32>} : memref<128x256xf32, #tpu.memory_space<vmem>>, vector<128x256xf32>,
    return
  }
  func.func @transform_0(%arg0: i32) -> (i32, i32) {
    %c0_i32 = arith.constant 0 : i32
    %c0_i32_0 = arith.constant 0 : i32
    return %arg0, %c0_i32 : i32, i32
  }
  func.func @transform_1(%arg0: i32) -> (i32, i32) {
    %c0_i32 = arith.constant 0 : i32
    %c0_i32_0 = arith.constant 0 : i32
    %c0_i32_1 = arith.constant 0 : i32
    return %c0_i32, %c0_i32_0 : i32, i32
  }
  func.func @transform_2(%arg0: i32) -> (i32, i32) {
    %c0_i32 = arith.constant 0 : i32
    %c0_i32_0 = arith.constant 0 : i32
    %c0_i32_1 = arith.constant 0 : i32
    return %c0_i32, %c0_i32_0 : i32, i32
  }
  func.func @transform_3(%arg0: i32) -> (i32, i32) {
    %c0_i32 = arith.constant 0 : i32
    %c0_i32_0 = arith.constant 0 : i32
    return %arg0, %c0_i32 : i32, i32
  }
}

</mosaic_0001>

<bundles_post_ra>
// kernel: tpu_custom_call.1
= control target key start
LH: loop header
LB: loop body
LE: loop exit
PB: predicated region body
PF: predicated region fallthrough
CT: control target
= control target key end

     0   :  { %8 = vsyncpa [#allocation3], 0  ;;  %s2483_s0 = inlined_call_operand.hbm [shape: f32[512,256], index: 0, kind: input, shape index: {}]   ;;  %s2484_s1 = inlined_call_operand.hbm [shape: f32[1,256], index: 1, kind: input, shape index: {}]   ;;  %s2485_s2 = inlined_call_operand.hbm [shape: f32[1,256], index: 2, kind: input, shape index: {}]   ;;  %s2486_s3 = inlined_call_operand.hbm [shape: f32[512,256], index: 3, kind: output, shape index: {}]  }
   0x1   :  { %10 = vsyncpa [#allocation3 + $0x1], 0 }
   0x2   :  { %11 = vsyncpa [#allocation6], 0 }
   0x3   :  { %12 = vsyncpa [#allocation4], 0 }
   0x4   :  { %14 = vsyncpa [#allocation4 + $0x1], 0  ;;  %s1497_s12 = smov 0   ;;  %s1499_s13 = smov 0  }
   0x5   :  { %s1501_s14 = smov 0   ;;  %s1503_s15 = smov 0  }
   0x6 LB: > { %s1518_s16 = sadd.s32 4294967295, %s1467_s15   ;;  %s1142_s17 = sadd.s32 4294967294, %s1467_s15   ;;  %s1467_s15 = sphi %s1503_s15, %s2540_s15   ;;  %s1463_s14 = sphi %s1501_s14, %s2539_s14   ;;  %s1459_s13 = sphi %s1499_s13, %s2538_s13   ;;  %s1455_s12 = sphi %s1497_s12, %s2537_s12  }
   0x7   : > { %s1522_s18 = sadd.s32 1, %s1467_s15   ;;  %s27_s19 = sadd.s32 1, %s1463_s14 }
   0x8   : > { %s24_s20 = ssub.s32 %s1467_s15, %s1522_s18  ;;  %p34_p0 = scmp.ne.s32.totalorder %s1463_s14, %s1459_s13 }
   0x9   : > { %p25_p1 = scmp.eq.s32.totalorder %s24_s20, 0  ;;  %p35_p2 = scmp.eq.s32.totalorder %s1467_s15, 0 }
   0xa   : > { %p40_p3 = scmp.ne.s32.totalorder %s1459_s13, %s1455_s12  ;;  %p41_p4 = scmp.eq.s32.totalorder %s1518_s16, 0 }
   0xb   : > { %s1534_s21 = scalar_select %p25_p1, %s1463_s14, %s27_s19  }
   0xc   : > { %p1536_p5 = por %p35_p2, %p34_p0  ;;  %p1542_p6 = por %p41_p4, %p40_p3 }
   0xd   : > { %p106_p7 = scmp.eq.s32.totalorder %s1518_s16, 3  ;;  %p112_p8 = scmp.eq.s32.totalorder %s1142_s17, 3 }
   0xe   : > { %p1143_p9 = scmp.ge.s32.totalorder %s1467_s15, 1  ;;  %p119_p10 = scmp.lt.s32.totalorder %s1467_s15, 5 }
   0xf   : > { %p1549_p11 = por %p106_p7, %p34_p0  ;;  %p1553_p12 = por %p112_p8, %p40_p3 }
  0x10   : > { %p1557_p13 = pnand %p1143_p9, %p119_p10  ;;  %s131_s29 = sshll.u32 %s2484_s1, 4  ;;  %s132_s29 = int_to_ptr.hbm [resolvable:$true] %s131_s29 }
  0x11   : > { %s1469_s30 = smov [#allocation5]   ;;  %p1195_p2 = scmp.lt.s32.totalorder %s1467_s15, 4 }
  0x12   : > { %p1178_p1 = pneg %p1557_p13  ;;  %s133_s4 = sshll.u32 %s1469_s30, 4  ;;  %s134_s4 = int_to_ptr.vmem [resolvable:$true] %s133_s4 }
  0x13   : > { %s143_s7 = sshll.u32 %s2485_s2, 4  ;;  %p1574_p3 = pnand %p1195_p2, %p1536_p5  ;;  %s144_s7 = int_to_ptr.hbm [resolvable:$true] %s143_s7 }
  0x14   : > { %p1179_p0 = pnand %p1178_p1, %p41_p4  ;;  %s1470_s9 = smov [#allocation7]  }
  0x15   : > { %s145_s10 = sshll.u32 %s1470_s9, 4  ;;  %s156_s11 = sand.u32 1, %s1463_s14   ;;  %s146_s10 = int_to_ptr.vmem [resolvable:$true] %s145_s10 }
  0x16   : > { %1181 = dma.hbm_to_vmem [thread:$0]  (!%p1179_p0), %s132_s29, 32, %s134_s4, [#allocation6]  }
  0x17   : > { %1184 = dma.hbm_to_vmem [thread:$0]  (!%p1179_p0), %s144_s7, 32, %s146_s10, [#allocation6]  }
  0x18   : > { %s1147_s17 = sshll.u32 %s156_s11, 8  ;;  %s1163_s19 = sshll.u32 %s1467_s15, 8 }
  0x19   : > { %s166_s28 = scalar_lea.hbm %s2483_s0, %s1163_s19  ;;  %s160_s30 = scalar_lea.vmem [#allocation2], %s1147_s17 }
  0x1a   : > { %s169_s5 = sshll.u32 %s160_s30, 4  ;;  %s167_s29 = sshll.u32 %s166_s28, 4  ;;  %s170_s5 = int_to_ptr.vmem [resolvable:$true] %s169_s5  ;;  %s168_s29 = int_to_ptr.hbm [resolvable:$true] %s167_s29 }
  0x1b   : > { %s157_s22 = scalar_lea.sflag [#allocation3], %s156_s11  ;;  %s1367_s4 = sshra.s32 %s168_s29, 4  ;;  %s1368_s4 = int_to_ptr.hbm [resolvable:$true] %s1367_s4 }
  0x1c   : > { %s1369_s6 = scalar_lea.hbm %s1368_s4, 256  ;;  %p1371_p7 = pneg %p1574_p3 }
  0x1d   : > { %p1370_p5 = scmp.ne.s32.totalorder %s1368_s4, %s1369_s6  ;;  %s1374_s10 = scalar_lea.hbm %s2483_s0, 1024 }
  0x1e   : > { %p1375_p10 = scmp.lt.s32.totalorder %s1368_s4, %s2483_s0  ;;  %p1376_p1 = scmp.lt.s32.totalorder %s1374_s10, %s1369_s6 }
  0x1f   : > { %p1372_p8 = pnand %p1371_p7, %p1370_p5 }
  0x20   : > { %p1377_p0 = por %p1376_p1, %p1375_p10 }
  0x21   : > { %p1373_p9 = pneg %p1372_p8 }
  0x23   : > { %p1378_p2 = pnand %p1377_p0, %p1373_p9 }
  0x25   : > { %1381 = shalt.err (!%p1378_p2)
}
  0x26   : > { %s1471_s11 = smov 256   ;;  %s1472_s17 = smov 16  }
  0x27   : > { %1188 = dma.hbm_to_vmem [thread:$0]  (!%p1574_p3), %s168_s29, 4096, %s170_s5, %s157_s22, %s1471_s11, %s1471_s11, %s1472_s17  }
  0x28   : > { %181 = sbr.rel (%p1557_p13) target bundleno = 459 (0x1cb), region = 32 }
  0x2d   : > { %s1596_s27 = sand.u32 1, %s1459_s13  }
  0x2e   : > { %s1152_s28 = sshll.u32 %s1596_s27, 8  ;;  %s184_s30 = scalar_lea.sflag [#allocation3], %s1596_s27 }
  0x2f   : > { %s1602_s4 = scalar_lea.vmem [#allocation2], %s1152_s28 }
  0x30   : > { %1442 = dma.done.wait (%p1542_p6), %s184_s30, 4096  }
  0x31   : > { %1444 = vsyncadd (%p1542_p6), %s184_s30, 4294963200 }
  0x32   : > { %1446 = dma.done.wait (%p41_p4), [#allocation6], 64  }
  0x33   : > { %1448 = vsyncadd (%p41_p4), [#allocation6], 4294967232  ;;  %v1613_v0 = vld [vmem:[%s1602_s4 + $0x40] sm:$0xff]  ;;  %v1616_v1 = vld [vmem:[%s1602_s4 + $0x48] sm:$0xff]  ;;  %v1473_v48 = vmov 256.0   ;;  %s2081_s23 = scalar_lea.vmem [#allocation8], %s1152_s28 }
  0x34   : > { %v1619_v2 = vld [vmem:[%s1602_s4 + $0x20] sm:$0xff]  ;;  %v267_v3 = vadd.f32 %v1616_v1, %v1613_v0  ;;  %v1624_v4 = vld [vmem:[%s1602_s4 + $0x28] sm:$0xff]  ;;  %v1637_v9 = vld [vmem:[%s1602_s4 + $0x50] sm:$0xff]  ;;  %1239 = vrcp.f32 %v1473_v48  ;;  %s1165_s26 = sshll.u32 %s1518_s16, 8  ;;  %s1047_s16 = sshll.u32 %s2081_s23, 4  ;;  %s1048_s16 = int_to_ptr.vmem [resolvable:$true] %s1047_s16 }
  0x35   : > { %v1627_v5 = vld [vmem:[%s1602_s4] sm:$0xff]  ;;  %v1630_v6 = vld [vmem:[%s1602_s4 + $0x8] sm:$0xff]  ;;  %v261_v7 = vadd.f32 %v1624_v4, %v1619_v2  ;;  %v1640_v10 = vld [vmem:[%s1602_s4 + $0x58] sm:$0xff]  ;;  %s1046_s29 = scalar_lea.hbm %s2486_s3, %s1165_s26  ;;  %s1034_s6 = scalar_lea.sflag [#allocation4], %s1596_s27 }
  0x36   : > { %v255_v8 = vadd.f32 %v1630_v6, %v1627_v5  ;;  %268 = vadd.xlane.f32.xlu2 %v267_v3  ;;  %v1643_v11 = vld [vmem:[%s1602_s4 + $0x30] sm:$0xff]  ;;  %v1646_v12 = vld [vmem:[%s1602_s4 + $0x38] sm:$0xff]  ;;  %v270_v15 = vadd.f32 %v1640_v10, %v1637_v9  ;;  %v1661_v18 = vld [vmem:[%s1602_s4 + $0x80] sm:$0xff]  ;;  %s1049_s22 = sshll.u32 %s1046_s29, 4  ;;  %s1417_s19 = scalar_lea.hbm %s2486_s3, 1024  ;;  %s1050_s22 = int_to_ptr.hbm [resolvable:$true] %s1049_s22 }
  0x37   : > { %262 = vadd.xlane.f32.xlu1 %v261_v7  ;;  %v1649_v13 = vld [vmem:[%s1602_s4 + $0x10] sm:$0xff]  ;;  %v1652_v14 = vld [vmem:[%s1602_s4 + $0x18] sm:$0xff]  ;;  %v264_v16 = vadd.f32 %v1646_v12, %v1643_v11  ;;  %v1664_v19 = vld [vmem:[%s1602_s4 + $0x88] sm:$0xff]  ;;  %s1411_s7 = sshra.s32 %s1050_s22, 4  ;;  %s1412_s7 = int_to_ptr.hbm [resolvable:$true] %s1411_s7 }
  0x38   : > { %256 = vadd.xlane.f32.xlu0 %v255_v8  ;;  %v258_v17 = vadd.f32 %v1652_v14, %v1649_v13  ;;  %v1667_v20 = vld [vmem:[%s1602_s4 + $0x60] sm:$0xff]  ;;  %v1670_v21 = vld [vmem:[%s1602_s4 + $0x68] sm:$0xff]  ;;  %v1673_v22 = vld [vmem:[%s1602_s4 + $0x70] sm:$0xff]  ;;  %v279_v24 = vadd.f32 %v1664_v19, %v1661_v18  ;;  %s1413_s9 = scalar_lea.hbm %s1412_s7, 256  ;;  %p1418_p3 = scmp.lt.s32.totalorder %s1412_s7, %s2486_s3 }
  0x39   : > { %v1676_v23 = vld [vmem:[%s1602_s4 + $0x78] sm:$0xff]  ;;  %v273_v25 = vadd.f32 %v1670_v21, %v1667_v20  ;;  %v1685_v27 = vld [vmem:[%s1602_s4 + $0xb0] sm:$0xff]  ;;  %v1697_v31 = vld [vmem:[%s1602_s4 + $0xa0] sm:$0xff]  ;;  %p1414_p4 = scmp.ne.s32.totalorder %s1412_s7, %s1413_s9  ;;  %p1419_p5 = scmp.lt.s32.totalorder %s1417_s19, %s1413_s9 }
  0x3a   : > { %v276_v26 = vadd.f32 %v1676_v23, %v1673_v22  ;;  %v1688_v28 = vld [vmem:[%s1602_s4 + $0xb8] sm:$0xff]  ;;  %v1691_v29 = vld [vmem:[%s1602_s4 + $0x90] sm:$0xff]  ;;  %v1700_v32 = vld [vmem:[%s1602_s4 + $0xa8] sm:$0xff]  ;;  %v1240_v49 = vpop.eup %1239 }
  0x3b   : > { %v1694_v30 = vld [vmem:[%s1602_s4 + $0x98] sm:$0xff]  ;;  %v288_v33 = vadd.f32 %v1688_v28, %v1685_v27  ;;  %v285_v35 = vadd.f32 %v1700_v32, %v1697_v31  ;;  %v1709_v36 = vld [vmem:[%s1602_s4 + $0xe0] sm:$0xff]  ;;  %v1712_v37 = vld [vmem:[%s1602_s4 + $0xe8] sm:$0xff]  ;;  %v304_v50 = vmul.f32 256.0, %v1240_v49  ;;  %vm308_vm0 = vweird.f32 %v1240_v49  ;;  %p1415_p6 = pnand %p1414_p4, %p1549_p11  ;;  %p1420_p7 = por %p1419_p5, %p1418_p3 }
  0x3c   : > { %v282_v34 = vadd.f32 %v1694_v30, %v1691_v29  ;;  %v1715_v38 = vld [vmem:[%s1602_s4 + $0xc0] sm:$0xff]  ;;  %v1718_v39 = vld [vmem:[%s1602_s4 + $0xc8] sm:$0xff]  ;;  %v1721_v40 = vld [vmem:[%s1602_s4 + $0xd0] sm:$0xff]  ;;  %v297_v42 = vadd.f32 %v1712_v37, %v1709_v36 }
  0x3d   : > { %v1724_v41 = vld [vmem:[%s1602_s4 + $0xd8] sm:$0xff]  ;;  %v291_v43 = vadd.f32 %v1718_v39, %v1715_v38  ;;  %v1733_v45 = vld [vmem:[%s1602_s4 + $0xf0] sm:$0xff]  ;;  %v305_v51 = vsub.f32 1.0, %v304_v50  ;;  %p1416_p13 = pneg %p1415_p6 }
  0x3e   : > { %271 = vadd.xlane.f32.xlu2 %v270_v15  ;;  %v294_v44 = vadd.f32 %v1724_v41, %v1721_v40  ;;  %v1736_v46 = vld [vmem:[%s1602_s4 + $0xf8] sm:$0xff] }
  0x3f   : > { %265 = vadd.xlane.f32.xlu1 %v264_v16  ;;  %v300_v47 = vadd.f32 %v1736_v46, %v1733_v45  ;;  %v306_v52 = vmul.f32 %v1240_v49, %v305_v51  ;;  %p1421_p8 = pnand %p1420_p7, %p1416_p13 }
  0x40   : > { %259 = vadd.xlane.f32.xlu0 %v258_v17 }
  0x41   : > { %v307_v53 = vadd.f32 %v1240_v49, %v306_v52 }
  0x43   : > { %v1740_v54 = vsel %vm308_vm0, %v1240_v49, %v307_v53 }
  0x46   : > { %280 = vadd.xlane.f32.xlu2 %v279_v24 }
  0x47   : > { %277 = vadd.xlane.f32.xlu1 %v276_v26 }
  0x48   : > { %274 = vadd.xlane.f32.xlu0 %v273_v25 }
  0x4e   : > { %289 = vadd.xlane.f32.xlu2 %v288_v33 }
  0x4f   : > { %286 = vadd.xlane.f32.xlu1 %v285_v35 }
  0x50   : > { %283 = vadd.xlane.f32.xlu0 %v282_v34 }
  0x56   : > { %298 = vadd.xlane.f32.xlu2 %v297_v42 }
  0x57   : > { %295 = vadd.xlane.f32.xlu1 %v294_v44 }
  0x58   : > { %292 = vadd.xlane.f32.xlu0 %v291_v43 }
  0x60   : > { %301 = vadd.xlane.f32.xlu0 %v300_v47 }
  0xa9   : > { %v269_v55 = vpop.xlane.xlu2 %268 }
  0xaa   : > { %v263_v56 = vpop.xlane.xlu1 %262  ;;  %v314_v44 = vmul.f32 %v1740_v54, %v269_v55 }
  0xab   : > { %v257_v57 = vpop.xlane.xlu0 %256  ;;  %v312_v58 = vmul.f32 %v1740_v54, %v263_v56 }
  0xac   : > { %v310_v59 = vmul.f32 %v1740_v54, %v257_v57  ;;  %v1799_v51 = vsub.f32 %v1613_v0, %v314_v44  ;;  %v1802_v52 = vsub.f32 %v1616_v1, %v314_v44 }
  0xad   : > { %v1745_v60 = vsub.f32 %v1619_v2, %v312_v58  ;;  %v1748_v61 = vsub.f32 %v1624_v4, %v312_v58 }
  0xae   : > { %v1751_v62 = vsub.f32 %v1627_v5, %v310_v59  ;;  %v1754_v63 = vsub.f32 %v1630_v6, %v310_v59 }
  0xaf   : > { %v362_v3 = vmul.f32 %v1745_v60, %v1745_v60  ;;  %v363_v7 = vmul.f32 %v1748_v61, %v1748_v61 }
  0xb0   : > { %v358_v8 = vmul.f32 %v1751_v62, %v1751_v62  ;;  %v359_v2 = vmul.f32 %v1754_v63, %v1754_v63 }
  0xb1   : > { %v272_v4 = vpop.xlane.xlu2 %271  ;;  %v396_v15 = vadd.f32 %v363_v7, %v362_v3 }
  0xb2   : > { %v390_v16 = vadd.f32 %v359_v2, %v358_v8  ;;  %v315_v5 = vmul.f32 %v1740_v54, %v272_v4  ;;  %v266_v17 = vpop.xlane.xlu1 %265 }
  0xb3   : > { %v260_v6 = vpop.xlane.xlu0 %259  ;;  %v313_v24 = vmul.f32 %v1740_v54, %v266_v17  ;;  %397 = vadd.xlane.f32.xlu0 %v396_v15 }
  0xb4   : > { %v311_v25 = vmul.f32 %v1740_v54, %v260_v6  ;;  %391 = vadd.xlane.f32.xlu1 %v390_v16  ;;  %v1768_v26 = vsub.f32 %v1637_v9, %v315_v5  ;;  %v1771_v33 = vsub.f32 %v1640_v10, %v315_v5 }
  0xb5   : > { %v1774_v34 = vsub.f32 %v1643_v11, %v313_v24  ;;  %v1777_v35 = vsub.f32 %v1646_v12, %v313_v24 }
  0xb6   : > { %v1780_v42 = vsub.f32 %v1649_v13, %v311_v25  ;;  %v1783_v43 = vsub.f32 %v1652_v14, %v311_v25  ;;  %v368_v9 = vmul.f32 %v1768_v26, %v1768_v26  ;;  %v369_v10 = vmul.f32 %v1771_v33, %v1771_v33 }
  0xb7   : > { %v364_v11 = vmul.f32 %v1774_v34, %v1774_v34  ;;  %v365_v12 = vmul.f32 %v1777_v35, %v1777_v35 }
  0xb8   : > { %v360_v13 = vmul.f32 %v1780_v42, %v1780_v42  ;;  %v361_v14 = vmul.f32 %v1783_v43, %v1783_v43  ;;  %v405_v47 = vadd.f32 %v369_v10, %v368_v9 }
  0xb9   : > { %v281_v48 = vpop.xlane.xlu2 %280  ;;  %v399_v49 = vadd.f32 %v365_v12, %v364_v11 }
  0xba   : > { %v393_v50 = vadd.f32 %v361_v14, %v360_v13  ;;  %v318_v53 = vmul.f32 %v1740_v54, %v281_v48  ;;  %v278_v56 = vpop.xlane.xlu1 %277 }
  0xbb   : > { %v275_v55 = vpop.xlane.xlu0 %274  ;;  %406 = vadd.xlane.f32.xlu0 %v405_v47  ;;  %v317_v0 = vmul.f32 %v1740_v54, %v278_v56 }
  0xbc   : > { %v316_v57 = vmul.f32 %v1740_v54, %v275_v55  ;;  %400 = vadd.xlane.f32.xlu1 %v399_v49  ;;  %v1807_v58 = vsub.f32 %v1661_v18, %v318_v53  ;;  %v1810_v59 = vsub.f32 %v1664_v19, %v318_v53  ;;  %394 = vadd.xlane.f32.xlu2 %v393_v50 }
  0xbd   : > { %v366_v18 = vmul.f32 %v1799_v51, %v1799_v51  ;;  %v367_v19 = vmul.f32 %v1802_v52, %v1802_v52  ;;  %v1835_v4 = vsub.f32 %v1676_v23, %v317_v0 }
  0xbe   : > { %v1814_v1 = vsub.f32 %v1667_v20, %v316_v57  ;;  %v1817_v3 = vsub.f32 %v1670_v21, %v316_v57  ;;  %v374_v7 = vmul.f32 %v1807_v58, %v1807_v58  ;;  %v375_v8 = vmul.f32 %v1810_v59, %v1810_v59 }
  0xbf   : > { %v1832_v21 = vsub.f32 %v1673_v22, %v317_v0  ;;  %v402_v24 = vadd.f32 %v367_v19, %v366_v18  ;;  %v373_v11 = vmul.f32 %v1835_v4, %v1835_v4 }
  0xc0   : > { %v370_v2 = vmul.f32 %v1814_v1, %v1814_v1  ;;  %v371_v20 = vmul.f32 %v1817_v3, %v1817_v3  ;;  %v414_v15 = vadd.f32 %v375_v8, %v374_v7 }
  0xc1   : > { %v290_v16 = vpop.xlane.xlu2 %289  ;;  %v372_v10 = vmul.f32 %v1832_v21, %v1832_v21 }
  0xc2   : > { %v408_v5 = vadd.f32 %v371_v20, %v370_v2  ;;  %v321_v17 = vmul.f32 %v1740_v54, %v290_v16  ;;  %v287_v25 = vpop.xlane.xlu1 %286 }
  0xc3   : > { %v284_v6 = vpop.xlane.xlu0 %283  ;;  %415 = vadd.xlane.f32.xlu0 %v414_v15  ;;  %v320_v9 = vmul.f32 %v1740_v54, %v287_v25  ;;  %v411_v49 = vadd.f32 %v373_v11, %v372_v10 }
  0xc4   : > { %v319_v44 = vmul.f32 %v1740_v54, %v284_v6  ;;  %409 = vadd.xlane.f32.xlu1 %v408_v5  ;;  %v1841_v22 = vsub.f32 %v1685_v27, %v321_v17  ;;  %v1844_v23 = vsub.f32 %v1688_v28, %v321_v17  ;;  %403 = vadd.xlane.f32.xlu2 %v402_v24 }
  0xc5   : > { %v1861_v14 = vsub.f32 %v1697_v31, %v320_v9 }
  0xc6   : > { %v1851_v12 = vsub.f32 %v1691_v29, %v319_v44  ;;  %v1854_v13 = vsub.f32 %v1694_v30, %v319_v44  ;;  %v380_v27 = vmul.f32 %v1841_v22, %v1841_v22  ;;  %v381_v28 = vmul.f32 %v1844_v23, %v1844_v23 }
  0xc7   : > { %v1868_v29 = vsub.f32 %v1700_v32, %v320_v9  ;;  %v378_v0 = vmul.f32 %v1861_v14, %v1861_v14 }
  0xc8   : > { %v376_v47 = vmul.f32 %v1851_v12, %v1851_v12  ;;  %v377_v48 = vmul.f32 %v1854_v13, %v1854_v13  ;;  %v423_v30 = vadd.f32 %v381_v28, %v380_v27  ;;  %v1474_v27 = vmov 255.0  }
  0xc9   : > { %v299_v50 = vpop.xlane.xlu2 %298  ;;  %v379_v18 = vmul.f32 %v1868_v29, %v1868_v29  ;;  %1241 = vrcp.f32 %v1474_v27 }
  0xca   : > { %v417_v53 = vadd.f32 %v377_v48, %v376_v47  ;;  %v324_v55 = vmul.f32 %v1740_v54, %v299_v50  ;;  %v296_v57 = vpop.xlane.xlu1 %295 }
  0xcb   : > { %v293_v56 = vpop.xlane.xlu0 %292  ;;  %424 = vadd.xlane.f32.xlu0 %v423_v30  ;;  %v323_v8 = vmul.f32 %v1740_v54, %v296_v57  ;;  %v420_v5 = vadd.f32 %v379_v18, %v378_v0 }
  0xcc   : > { %v322_v31 = vmul.f32 %v1740_v54, %v293_v56  ;;  %418 = vadd.xlane.f32.xlu1 %v417_v53  ;;  %v1875_v7 = vsub.f32 %v1709_v36, %v324_v55  ;;  %v1878_v32 = vsub.f32 %v1712_v37, %v324_v55  ;;  %412 = vadd.xlane.f32.xlu2 %v411_v49 }
  0xcd   : > { %v1898_v16 = vsub.f32 %v1721_v40, %v323_v8 }
  0xce   : > { %2501 = vst [vmem:[#allocation12_spill] sm:$0xff] %v1875_v7  ;;  %v1884_v19 = vsub.f32 %v1715_v38, %v322_v31  ;;  %v1887_v2 = vsub.f32 %v1718_v39, %v322_v31  ;;  %v386_v20 = vmul.f32 %v1875_v7, %v1875_v7  ;;  %v387_v36 = vmul.f32 %v1878_v32, %v1878_v32 }
  0xcf   : > { %2502 = vst [vmem:[#allocation13_spill] sm:$0xff] %v1878_v32  ;;  %v1901_v38 = vsub.f32 %v1724_v41, %v323_v8  ;;  %v384_v25 = vmul.f32 %v1898_v16, %v1898_v16  ;;  %v1242_v28 = vpop.eup %1241 }
  0xd0   : > { %2503 = vst [vmem:[#allocation14_spill] sm:$0xff] %v1884_v19  ;;  %v382_v37 = vmul.f32 %v1884_v19, %v1884_v19  ;;  %v383_v15 = vmul.f32 %v1887_v2, %v1887_v2  ;;  %v432_v39 = vadd.f32 %v387_v36, %v386_v20  ;;  %v439_v47 = vmul.f32 255.0, %v1242_v28 }
  0xd1   : > { %2504 = vst [vmem:[#allocation15_spill] sm:$0xff] %v1887_v2  ;;  %v385_v44 = vmul.f32 %v1901_v38, %v1901_v38  ;;  %vm443_vm1 = vweird.f32 %v1242_v28 }
  0xd2   : > { %2505 = vst [vmem:[#allocation16_spill] sm:$0xff] %v1898_v16  ;;  %v426_v17 = vadd.f32 %v383_v15, %v382_v37  ;;  %v440_v48 = vsub.f32 1.0, %v439_v47 }
  0xd3   : > { %2506 = vst [vmem:[#allocation17_spill] sm:$0xff] %v1901_v38  ;;  %v302_v6 = vpop.xlane.xlu0 %301  ;;  %433 = vadd.xlane.f32.xlu0 %v432_v39  ;;  %v429_v10 = vadd.f32 %v385_v44, %v384_v25 }
  0xd4   : > { %v325_v24 = vmul.f32 %v1740_v54, %v302_v6  ;;  %427 = vadd.xlane.f32.xlu1 %v426_v17  ;;  %421 = vadd.xlane.f32.xlu2 %v420_v5  ;;  %v925_v17 = vld [vmem:[#allocation5] sm:$0x3] }
  0xd6   : > { %v1909_v40 = vsub.f32 %v1733_v45, %v325_v24  ;;  %v1912_v41 = vsub.f32 %v1736_v46, %v325_v24  ;;  %v441_v45 = vmul.f32 %v1242_v28, %v440_v48 }
  0xd8   : > { %2507 = vst [vmem:[#allocation18_spill] sm:$0xff] %v1909_v40  ;;  %v388_v9 = vmul.f32 %v1909_v40, %v1909_v40  ;;  %v389_v54 = vmul.f32 %v1912_v41, %v1912_v41  ;;  %v442_v30 = vadd.f32 %v1242_v28, %v441_v45 }
  0xd9   : > { %2508 = vst [vmem:[#allocation19_spill] sm:$0xff] %v1912_v41 }
  0xda   : > { %v435_v11 = vadd.f32 %v389_v54, %v388_v9  ;;  %v1918_v46 = vsel %vm443_vm1, %v1242_v28, %v442_v30  ;;  %v1934_v54 = vperm.slane %v925_v17, 0 }
  0xdc   : > { %436 = vadd.xlane.f32.xlu1 %v435_v11  ;;  %430 = vadd.xlane.f32.xlu2 %v429_v10  ;;  %v1936_v10 = vperm.slane %v925_v17, 1 }
 0x126   : > { %v398_v50 = vpop.xlane.xlu0 %397 }
 0x127   : > { %v392_v49 = vpop.xlane.xlu1 %391  ;;  %v447_v55 = vmul.f32 %v1918_v46, %v398_v50 }
 0x128   : > { %v445_v53 = vmul.f32 %v1918_v46, %v392_v49 }
 0x129   : > { %vm492_vm4 = vcmp.eq.f32.partialorder %v447_v55, inf  ;;  %vm494_vm5 = vcmp.eq.f32.partialorder %v447_v55, 0.0 }
 0x12a   : > { %1243 = vrsqrt.f32 %v445_v53  ;;  %vm468_vm2 = vcmp.eq.f32.partialorder %v445_v53, inf  ;;  %vm470_vm3 = vcmp.eq.f32.partialorder %v445_v53, 0.0  ;;  %v471_v50 = vand.u32 2147483648, %v445_v53 }
 0x12b   : > { %1245 = vrsqrt.f32 %v447_v55 }
 0x12e   : > { %v407_v57 = vpop.xlane.xlu0 %406 }
 0x12f   : > { %v401_v56 = vpop.xlane.xlu1 %400  ;;  %v395_v8 = vpop.xlane.xlu2 %394  ;;  %v1926_v18 = vmul.f32 %v1918_v46, %v407_v57 }
 0x130   : > { %v1244_v31 = vpop.eup %1243  ;;  %v1923_v0 = vmul.f32 %v1918_v46, %v401_v56  ;;  %v1929_v37 = vmul.f32 %v1918_v46, %v395_v8 }
 0x131   : > { %v1246_v20 = vpop.eup %1245  ;;  %v462_v36 = vmul.f32 %v1244_v31, %v445_v53  ;;  %vm528_vm10 = vcmp.eq.f32.partialorder %v1926_v18, inf  ;;  %vm530_vm12 = vcmp.eq.f32.partialorder %v1926_v18, 0.0 }
 0x132   : > { %v486_v15 = vmul.f32 %v1246_v20, %v447_v55  ;;  %1247 = vrsqrt.f32 %v1923_v0  ;;  %vm504_vm6 = vcmp.eq.f32.partialorder %v1923_v0, inf  ;;  %vm506_vm7 = vcmp.eq.f32.partialorder %v1923_v0, 0.0 }
 0x133   : > { %v463_v39 = vmul.f32 %v1244_v31, %v462_v36  ;;  %1249 = vrsqrt.f32 %v1929_v37  ;;  %vm480_vm8 = vcmp.eq.f32.partialorder %v1929_v37, inf  ;;  %vm482_vm9 = vcmp.eq.f32.partialorder %v1929_v37, 0.0 }
 0x134   : > { %v487_v5 = vmul.f32 %v1246_v20, %v486_v15  ;;  %1251 = vrsqrt.f32 %v1926_v18 }
 0x135   : > { %v464_v6 = vmul.f32 0.5, %v463_v39  ;;  %v963_v39 = vld [vmem:[#allocation7] sm:$0x3] }
 0x136   : > { %v488_v24 = vmul.f32 0.5, %v487_v5 }
 0x137   : > { %v465_v25 = vsub.f32 1.5, %v464_v6  ;;  %v410_v44 = vpop.xlane.xlu1 %409  ;;  %v404_v27 = vpop.xlane.xlu2 %403  ;;  %v495_v6 = vand.u32 2147483648, %v447_v55 }
 0x138   : > { %v1248_v9 = vpop.eup %1247  ;;  %v489_v11 = vsub.f32 1.5, %v488_v24  ;;  %v1939_v28 = vmul.f32 %v1918_v46, %v410_v44  ;;  %v1943_v30 = vmul.f32 %v1918_v46, %v404_v27  ;;  %v416_v27 = vpop.xlane.xlu0 %415 }
 0x139   : > { %v1250_v47 = vpop.eup %1249  ;;  %v466_v48 = vmul.f32 %v1244_v31, %v465_v25  ;;  %v498_v45 = vmul.f32 %v1248_v9, %v1923_v0 }
 0x13a   : > { %v1252_v49 = vpop.eup %1251  ;;  %v490_v56 = vmul.f32 %v1246_v20, %v489_v11  ;;  %v474_v57 = vmul.f32 %v1250_v47, %v1929_v37  ;;  %1253 = vrsqrt.f32 %v1943_v30 }
 0x13b   : > { %v467_v8 = vmul.f32 %v466_v48, %v445_v53  ;;  %v499_v36 = vmul.f32 %v1248_v9, %v498_v45  ;;  %v522_v15 = vmul.f32 %v1252_v49, %v1926_v18  ;;  %1255 = vrsqrt.f32 %v1939_v28 }
 0x13c   : > { %v491_v31 = vmul.f32 %v490_v56, %v447_v55  ;;  %v475_v5 = vmul.f32 %v1250_v47, %v474_v57  ;;  %v1951_v48 = vperm.slane %v963_v39, 0  ;;  %v1955_v57 = vperm.slane %v963_v39, 1 }
 0x13d   : > { %v469_v17 = vsel %vm468_vm2, %v445_v53, %v467_v8  ;;  %v500_v24 = vmul.f32 0.5, %v499_v36  ;;  %v523_v25 = vmul.f32 %v1252_v49, %v522_v15  ;;  %v1965_v53 = vmul.f32 %v1918_v46, %v416_v27 }
 0x13e   : > { %v472_v20 = vsel %vm470_vm3, %v471_v50, %v469_v17  ;;  %v493_v44 = vsel %vm492_vm4, %v447_v55, %v491_v31  ;;  %v476_v11 = vmul.f32 0.5, %v475_v5  ;;  %v507_v50 = vand.u32 2147483648, %v1923_v0 }
 0x13f   : > { %v1953_v45 = vadd.f32 1e-06, %v472_v20  ;;  %v496_v56 = vsel %vm494_vm5, %v495_v6, %v493_v44  ;;  %v501_v41 = vsub.f32 1.5, %v500_v24  ;;  %v524_v38 = vmul.f32 0.5, %v523_v25 }
 0x140   : > { %v1957_v40 = vadd.f32 1e-06, %v496_v56  ;;  %v477_v8 = vsub.f32 1.5, %v476_v11  ;;  %v1959_v36 = vpop.eup %1253  ;;  %v483_v31 = vand.u32 2147483648, %v1929_v37  ;;  %v531_v5 = vand.u32 2147483648, %v1926_v18 }
 0x141   : > { %1257 = vrcp.f32 %v1953_v45  ;;  %v1967_v55 = vpop.eup %1255  ;;  %v502_v15 = vmul.f32 %v1248_v9, %v501_v41  ;;  %v525_v17 = vsub.f32 1.5, %v524_v38  ;;  %v510_v6 = vmul.f32 %v1959_v36, %v1943_v30 }
 0x142   : > { %1259 = vrcp.f32 %v1957_v40  ;;  %v478_v39 = vmul.f32 %v1250_v47, %v477_v8  ;;  %v534_v41 = vmul.f32 %v1967_v55, %v1939_v28  ;;  %vm674_vm11 = vweird.f32 %v1953_v45 }
 0x143   : > { %v503_v20 = vmul.f32 %v502_v15, %v1923_v0  ;;  %1261 = vrsqrt.f32 %v1965_v53  ;;  %v678_v38 = vand.u32 2147483647, %v1953_v45  ;;  %v526_v9 = vmul.f32 %v1252_v49, %v525_v17 }
 0x144   : > { %v479_v44 = vmul.f32 %v478_v39, %v1929_v37  ;;  %v511_v47 = vmul.f32 %v1959_v36, %v510_v6  ;;  %v680_v27 = vand.u32 2147483648, %v1953_v45  ;;  %v706_v56 = vand.u32 2147483647, %v1957_v40 }
 0x145   : > { %v505_v8 = vsel %vm504_vm6, %v1923_v0, %v503_v20  ;;  %v708_v17 = vand.u32 2147483648, %v1957_v40  ;;  %v535_v32 = vmul.f32 %v1967_v55, %v534_v41  ;;  %vm702_vm13 = vweird.f32 %v1957_v40 }
 0x146   : > { %v481_v15 = vsel %vm480_vm8, %v1929_v37, %v479_v44  ;;  %v508_v6 = vsel %vm506_vm7, %v507_v50, %v505_v8  ;;  %v527_v7 = vmul.f32 %v526_v9, %v1926_v18  ;;  %v512_v2 = vmul.f32 0.5, %v511_v47 }
 0x147   : > { %v1258_v11 = vpop.eup %1257  ;;  %v484_v25 = vsel %vm482_vm9, %v483_v31, %v481_v15  ;;  %v2004_v16 = vadd.f32 1e-06, %v508_v6  ;;  %vm2013_vm14 = vcmp.eq.f32.partialorder %v678_v38, 8.507059e+37  ;;  %v681_v37 = vor.u32 1.1754944e-38, %v680_v27 }
 0x148   : > { %v1260_v39 = vpop.eup %1259  ;;  %v670_v49 = vmul.f32 %v1258_v11, %v1953_v45  ;;  %v2006_v20 = vadd.f32 1e-06, %v484_v25  ;;  %vm675_vm15 = vweird.f32 %v1258_v11  ;;  %vm2018_vm0 = vcmp.eq.f32.partialorder %v706_v56, 8.507059e+37 }
 0x149   : > { %v698_v24 = vmul.f32 %v1260_v39, %v1957_v40  ;;  %v2011_v19 = vpop.eup %1261  ;;  %1263 = vrcp.f32 %v2004_v16  ;;  %vm703_vm1 = vweird.f32 %v1260_v39  ;;  %v709_v9 = vor.u32 1.1754944e-38, %v708_v17  ;;  %vm676_vm2 = vmor %vm674_vm11, %vm675_vm15 }
 0x14a   : > { %v671_v44 = vsub.f32 1.0, %v670_v49  ;;  %1265 = vrcp.f32 %v2006_v20  ;;  %v536_v47 = vmul.f32 0.5, %v535_v32  ;;  %v720_v8 = vand.u32 2147483647, %v2004_v16  ;;  %vm2036_vm3 = vmor %vm702_vm13, %vm703_vm1 }
 0x14b   : > { %v699_v50 = vsub.f32 1.0, %v698_v24  ;;  %v529_v24 = vsel %vm528_vm10, %v1926_v18, %v527_v7  ;;  %v513_v27 = vsub.f32 1.5, %v512_v2  ;;  %v722_v15 = vand.u32 2147483648, %v2004_v16 }
 0x14c   : > { %v672_v31 = vmul.f32 %v1258_v11, %v671_v44  ;;  %v532_v49 = vsel %vm530_vm12, %v531_v5, %v529_v24  ;;  %v558_v32 = vmul.f32 %v2011_v19, %v1965_v53  ;;  %vm716_vm4 = vweird.f32 %v2004_v16 }
 0x14d   : > { %v700_v41 = vmul.f32 %v1260_v39, %v699_v50  ;;  %v692_v7 = vand.u32 2147483647, %v2006_v20  ;;  %v694_v2 = vand.u32 2147483648, %v2006_v20  ;;  %v2043_v45 = vadd.f32 1e-06, %v532_v49  ;;  %v413_v50 = vpop.xlane.xlu2 %412 }
 0x14e   : > { %v673_v38 = vadd.f32 %v1258_v11, %v672_v31  ;;  %vm688_vm5 = vweird.f32 %v2006_v20  ;;  %v514_v40 = vmul.f32 %v1959_v36, %v513_v27  ;;  %vm516_vm6 = vcmp.eq.f32.partialorder %v1943_v30, inf }
 0x14f   : > { %v701_v56 = vadd.f32 %v1260_v39, %v700_v41  ;;  %v1264_v18 = vpop.eup %1263  ;;  %v537_v44 = vsub.f32 1.5, %v536_v47  ;;  %vm2057_vm7 = vcmp.eq.f32.partialorder %v720_v8, 8.507059e+37  ;;  %vm518_vm8 = vcmp.eq.f32.partialorder %v1943_v30, 0.0 }
 0x150   : > { %v677_v17 = vsel %vm676_vm2, %v1258_v11, %v673_v38  ;;  %v1266_v31 = vpop.eup %1265  ;;  %v2069_v8 = vmul.f32 %v1918_v46, %v413_v50  ;;  %1267 = vrcp.f32 %v2043_v45  ;;  %vm540_vm9 = vcmp.eq.f32.partialorder %v1939_v28, inf }
 0x151   : > { %v682_v5 = vsel %vm2013_vm14, %v681_v37, %v677_v17  ;;  %v705_v11 = vsel %vm2036_vm3, %v1260_v39, %v701_v56  ;;  %v712_v37 = vmul.f32 %v1264_v18, %v2004_v16  ;;  %v684_v24 = vmul.f32 %v1266_v31, %v2006_v20 }
 0x152   : > { %v893_v41 = vmul.f32 %v682_v5, %v1751_v62  ;;  %v894_v38 = vmul.f32 %v682_v5, %v1754_v63  ;;  %v710_v0 = vsel %vm2018_vm0, %v709_v9, %v705_v11  ;;  %v559_v62 = vmul.f32 %v2011_v19, %v558_v32 }
 0x153   : > { %v897_v36 = vmul.f32 %v710_v0, %v1745_v60  ;;  %v898_v47 = vmul.f32 %v710_v0, %v1748_v61  ;;  %v713_v9 = vsub.f32 1.0, %v712_v37  ;;  %v685_v60 = vsub.f32 1.0, %v684_v24 }
 0x154   : > { %v931_v63 = vmul.f32 %v1934_v54, %v893_v41  ;;  %v932_v25 = vmul.f32 %v1936_v10, %v894_v38  ;;  %vm717_vm10 = vweird.f32 %v1264_v18  ;;  %vm689_vm11 = vweird.f32 %v1266_v31 }
 0x155   : > { %v935_v27 = vmul.f32 %v1934_v54, %v897_v36  ;;  %v936_v56 = vmul.f32 %v1936_v10, %v898_v47  ;;  %v714_v32 = vmul.f32 %v1264_v18, %v713_v9  ;;  %v686_v5 = vmul.f32 %v1266_v31, %v685_v60  ;;  %vm718_vm13 = vmor %vm716_vm4, %vm717_vm10 }
 0x156   : > { %v969_v61 = vadd.f32 %v1951_v48, %v931_v63  ;;  %v970_v49 = vadd.f32 %v1955_v57, %v932_v25  ;;  %v723_v50 = vor.u32 1.1754944e-38, %v722_v15  ;;  %v515_v41 = vmul.f32 %v514_v40, %v1943_v30  ;;  %vm690_vm15 = vmor %vm688_vm5, %vm689_vm11 }
 0x157   : > { %v973_v17 = vadd.f32 %v1951_v48, %v935_v27  ;;  %v974_v6 = vadd.f32 %v1955_v57, %v936_v56  ;;  %v715_v11 = vadd.f32 %v1264_v18, %v714_v32  ;;  %v538_v38 = vmul.f32 %v1967_v55, %v537_v44 }
 0x158   : > { %1001 = vst [vmem:[%s2081_s23] sm:$0xff] %v969_v61  ;;  %vm542_vm12 = vcmp.eq.f32.partialorder %v1939_v28, 0.0  ;;  %v687_v0 = vadd.f32 %v1266_v31, %v686_v5  ;;  %vm2090_vm14 = vcmp.eq.f32.partialorder %v692_v7, 8.507059e+37  ;;  %v695_v36 = vor.u32 1.1754944e-38, %v694_v2  ;;  %v1268_v7 = vpop.eup %1267 }
 0x159   : > { %1002 = vst [vmem:[%s2081_s23 + $0x8] sm:$0xff] %v970_v49  ;;  %v560_v47 = vmul.f32 0.5, %v559_v62  ;;  %v719_v15 = vsel %vm718_vm13, %v1264_v18, %v715_v11  ;;  %v517_v55 = vsel %vm516_vm6, %v1943_v30, %v515_v41  ;;  %v539_v16 = vmul.f32 %v538_v38, %v1939_v28 }
 0x15a   : > { %1005 = vst [vmem:[%s2081_s23 + $0x20] sm:$0xff] %v973_v17  ;;  %1269 = vrsqrt.f32 %v2069_v8  ;;  %v724_v2 = vsel %vm2057_vm7, %v723_v50, %v719_v15  ;;  %v691_v40 = vsel %vm690_vm15, %v1266_v31, %v687_v0  ;;  %v748_v18 = vand.u32 2147483647, %v2043_v45 }
 0x15b   : > { %1006 = vst [vmem:[%s2081_s23 + $0x28] sm:$0xff] %v974_v6  ;;  %v2519_v44 = vand.u32 2147483648, %v1943_v30  ;;  %v899_v24 = vmul.f32 %v724_v2, %v1774_v34  ;;  %v900_v62 = vmul.f32 %v724_v2, %v1777_v35  ;;  %v696_v63 = vsel %vm2090_vm14, %v695_v36, %v691_v40  ;;  %v419_v40 = vpop.xlane.xlu1 %418 }
 0x15c   : > { %v740_v25 = vmul.f32 %v1268_v7, %v2043_v45  ;;  %v895_v39 = vmul.f32 %v696_v63, %v1780_v42  ;;  %v896_v31 = vmul.f32 %v696_v63, %v1783_v43  ;;  %v561_v27 = vsub.f32 1.5, %v560_v47 }
 0x15d   : > { %v520_v20 = vsel %vm518_vm8, %v2519_v44, %v517_v55  ;;  %v937_v56 = vmul.f32 %v1934_v54, %v899_v24  ;;  %v938_v30 = vmul.f32 %v1936_v10, %v900_v62  ;;  %v541_v35 = vsel %vm540_vm9, %v1939_v28, %v539_v16 }
 0x15e   : > { %v2118_v9 = vadd.f32 1e-06, %v520_v20  ;;  %v741_v34 = vsub.f32 1.0, %v740_v25  ;;  %v933_v60 = vmul.f32 %v1934_v54, %v895_v39  ;;  %v934_v61 = vmul.f32 %v1936_v10, %v896_v31 }
 0x15f   : > { %v750_v42 = vand.u32 2147483648, %v2043_v45  ;;  %v975_v49 = vadd.f32 %v1951_v48, %v937_v56  ;;  %v976_v32 = vadd.f32 %v1955_v57, %v938_v30  ;;  %vm745_vm0 = vweird.f32 %v1268_v7 }
 0x160   : > { %1271 = vrcp.f32 %v2118_v9  ;;  %v1270_v43 = vpop.eup %1269  ;;  %v742_v17 = vmul.f32 %v1268_v7, %v741_v34  ;;  %v971_v6 = vadd.f32 %v1951_v48, %v933_v60  ;;  %v972_v5 = vadd.f32 %v1955_v57, %v934_v61 }
 0x161   : > { %v2520_v11 = vand.u32 2147483648, %v1939_v28  ;;  %1007 = vst [vmem:[%s2081_s23 + $0x30] sm:$0xff] %v975_v49  ;;  %vm744_vm1 = vweird.f32 %v2043_v45  ;;  %v562_v0 = vmul.f32 %v2011_v19, %v561_v27  ;;  %v751_v37 = vor.u32 1.1754944e-38, %v750_v42 }
 0x162   : > { %v743_v41 = vadd.f32 %v1268_v7, %v742_v17  ;;  %1008 = vst [vmem:[%s2081_s23 + $0x38] sm:$0xff] %v976_v32  ;;  %vm746_vm2 = vmor %vm744_vm1, %vm745_vm0  ;;  %v546_v36 = vmul.f32 %v1270_v43, %v2069_v8  ;;  %vm749_vm3 = vcmp.eq.f32.partialorder %v748_v18, 8.507059e+37  ;;  %vm564_vm4 = vcmp.eq.f32.partialorder %v1965_v53, inf }
 0x163   : > { %v544_v50 = vsel %vm542_vm12, %v2520_v11, %v541_v35  ;;  %1003 = vst [vmem:[%s2081_s23 + $0x10] sm:$0xff] %v971_v6  ;;  %v563_v45 = vmul.f32 %v562_v0, %v1965_v53  ;;  %vm566_vm5 = vcmp.eq.f32.partialorder %v1965_v53, 0.0  ;;  %v734_v18 = vand.u32 2147483647, %v2118_v9 }
 0x164   : > { %v2139_v38 = vadd.f32 1e-06, %v544_v50  ;;  %v747_v47 = vsel %vm746_vm2, %v1268_v7, %v743_v41  ;;  %1004 = vst [vmem:[%s2081_s23 + $0x18] sm:$0xff] %v972_v5  ;;  %v547_v19 = vmul.f32 %v1270_v43, %v546_v36  ;;  %v567_v7 = vand.u32 2147483648, %v1965_v53  ;;  %v422_v36 = vpop.xlane.xlu2 %421 }
 0x165   : > { %v752_v15 = vsel %vm749_vm3, %v751_v37, %v747_v47  ;;  %v736_v44 = vand.u32 2147483648, %v2118_v9  ;;  %v565_v20 = vsel %vm564_vm4, %v1965_v53, %v563_v45  ;;  %v2162_v27 = vmul.f32 %v1918_v46, %v419_v40 }
 0x166   : > { %1273 = vrcp.f32 %v2139_v38  ;;  %v1272_v28 = vpop.eup %1271  ;;  %v903_v55 = vmul.f32 %v752_v15, %v1768_v26  ;;  %v904_v16 = vmul.f32 %v752_v15, %v1771_v33  ;;  %v548_v24 = vmul.f32 0.5, %v547_v19  ;;  %v425_v33 = vpop.xlane.xlu0 %424 }
 0x167   : > { %v726_v2 = vmul.f32 %v1272_v28, %v2118_v9  ;;  %v568_v25 = vsel %vm566_vm5, %v567_v7, %v565_v20  ;;  %vm731_vm6 = vweird.f32 %v1272_v28  ;;  %vm730_vm7 = vweird.f32 %v2118_v9  ;;  %v428_v7 = vpop.xlane.xlu1 %427 }
 0x168   : > { %v941_v62 = vmul.f32 %v1934_v54, %v903_v55  ;;  %v942_v63 = vmul.f32 %v1936_v10, %v904_v16  ;;  %v2159_v39 = vadd.f32 1e-06, %v568_v25  ;;  %v549_v31 = vsub.f32 1.5, %v548_v24  ;;  %vm732_vm9 = vmor %vm730_vm7, %vm731_vm6 }
 0x169   : > { %v727_v26 = vsub.f32 1.0, %v726_v2  ;;  %v2170_v60 = vmul.f32 %v1918_v46, %v425_v33  ;;  %vm735_vm8 = vcmp.eq.f32.partialorder %v734_v18, 8.507059e+37  ;;  %v737_v42 = vor.u32 1.1754944e-38, %v736_v44 }
 0x16a   : > { %v979_v30 = vadd.f32 %v1951_v48, %v941_v62  ;;  %v980_v53 = vadd.f32 %v1955_v57, %v942_v63  ;;  %1275 = vrcp.f32 %v2159_v39  ;;  %v550_v49 = vmul.f32 %v1270_v43, %v549_v31 }
 0x16b   : > { %v728_v34 = vmul.f32 %v1272_v28, %v727_v26  ;;  %v762_v17 = vand.u32 2147483647, %v2139_v38  ;;  %vm552_vm10 = vcmp.eq.f32.partialorder %v2069_v8, inf  ;;  %1277 = vrsqrt.f32 %v2162_v27 }
 0x16c   : > { %v1274_v56 = vpop.eup %1273  ;;  %1011 = vst [vmem:[%s2081_s23 + $0x50] sm:$0xff] %v979_v30  ;;  %v764_v6 = vand.u32 2147483648, %v2139_v38  ;;  %v551_v5 = vmul.f32 %v550_v49, %v2069_v8  ;;  %v555_v11 = vand.u32 2147483648, %v2069_v8  ;;  %1279 = vrsqrt.f32 %v2170_v60 }
 0x16d   : > { %v754_v35 = vmul.f32 %v1274_v56, %v2139_v38  ;;  %v729_v61 = vadd.f32 %v1272_v28, %v728_v34  ;;  %1012 = vst [vmem:[%s2081_s23 + $0x58] sm:$0xff] %v980_v53  ;;  %vm759_vm11 = vweird.f32 %v1274_v56  ;;  %vm554_vm12 = vcmp.eq.f32.partialorder %v2069_v8, 0.0 }
 0x16e   : > { %v553_v37 = vsel %vm552_vm10, %v2069_v8, %v551_v5  ;;  %vm758_vm13 = vweird.f32 %v2139_v38  ;;  %vm763_vm14 = vcmp.eq.f32.partialorder %v762_v17, 8.507059e+37  ;;  %v765_v55 = vor.u32 1.1754944e-38, %v764_v6 }
 0x16f   : > { %v755_v32 = vsub.f32 1.0, %v754_v35  ;;  %v733_v9 = vsel %vm732_vm9, %v1272_v28, %v729_v61  ;;  %v556_v15 = vsel %vm554_vm12, %v555_v11, %v553_v37  ;;  %vm760_vm15 = vmor %vm758_vm13, %vm759_vm11  ;;  %v790_v8 = vand.u32 2147483647, %v2159_v39  ;;  %v431_v37 = vpop.xlane.xlu2 %430 }
 0x170   : > { %v738_v50 = vsel %vm735_vm8, %v737_v42, %v733_v9  ;;  %v1276_v47 = vpop.eup %1275  ;;  %v2192_v2 = vadd.f32 1e-06, %v556_v15  ;;  %v2195_v38 = vmul.f32 %v1918_v46, %v422_v36  ;;  %v792_v26 = vand.u32 2147483648, %v2159_v39 }
 0x171   : > { %v756_v41 = vmul.f32 %v1274_v56, %v755_v32  ;;  %v901_v43 = vmul.f32 %v738_v50, %v1799_v51  ;;  %v902_v0 = vmul.f32 %v738_v50, %v1802_v52  ;;  %v782_v51 = vmul.f32 %v1276_v47, %v2159_v39  ;;  %v2189_v52 = vpop.eup %1277 }
 0x172   : > { %v1280_v24 = vpop.eup %1279  ;;  %1281 = vrcp.f32 %v2192_v2  ;;  %vm787_vm0 = vweird.f32 %v1276_v47  ;;  %v570_v33 = vmul.f32 %v2189_v52, %v2162_v27  ;;  %v2207_v31 = vmul.f32 %v1918_v46, %v428_v7 }
 0x173   : > { %v757_v28 = vadd.f32 %v1274_v56, %v756_v41  ;;  %v939_v45 = vmul.f32 %v1934_v54, %v901_v43  ;;  %v940_v19 = vmul.f32 %v1936_v10, %v902_v0  ;;  %v783_v20 = vsub.f32 1.0, %v782_v51  ;;  %v434_v0 = vpop.xlane.xlu0 %433 }
 0x174   : > { %1283 = vrsqrt.f32 %v2195_v38  ;;  %vm786_vm1 = vweird.f32 %v2159_v39  ;;  %vm791_vm2 = vcmp.eq.f32.partialorder %v790_v8, 8.507059e+37  ;;  %v571_v53 = vmul.f32 %v2189_v52, %v570_v33 }
 0x175   : > { %v761_v16 = vsel %vm760_vm15, %v1274_v56, %v757_v28  ;;  %v977_v40 = vadd.f32 %v1951_v48, %v939_v45  ;;  %v978_v18 = vadd.f32 %v1955_v57, %v940_v19  ;;  %v784_v25 = vmul.f32 %v1276_v47, %v783_v20  ;;  %vm788_vm3 = vmor %vm786_vm1, %vm787_vm0 }
 0x176   : > { %v766_v44 = vsel %vm763_vm14, %v765_v55, %v761_v16  ;;  %v793_v61 = vor.u32 1.1754944e-38, %v792_v26  ;;  %v572_v32 = vmul.f32 0.5, %v571_v53  ;;  %vm576_vm4 = vcmp.eq.f32.partialorder %v2162_v27, inf }
 0x177   : > { %v905_v62 = vmul.f32 %v766_v44, %v1814_v1  ;;  %v906_v63 = vmul.f32 %v766_v44, %v1817_v3  ;;  %1009 = vst [vmem:[%s2081_s23 + $0x40] sm:$0xff] %v977_v40  ;;  %v594_v3 = vmul.f32 %v1280_v24, %v2170_v60  ;;  %v785_v30 = vadd.f32 %v1276_v47, %v784_v25 }
 0x178   : > { %1010 = vst [vmem:[%s2081_s23 + $0x48] sm:$0xff] %v978_v18  ;;  %v579_v17 = vand.u32 2147483648, %v2162_v27  ;;  %vm600_vm5 = vcmp.eq.f32.partialorder %v2170_v60, inf  ;;  %v1282_v39 = vpop.eup %1281  ;;  %vm578_vm6 = vcmp.eq.f32.partialorder %v2162_v27, 0.0  ;;  %vm602_vm7 = vcmp.eq.f32.partialorder %v2170_v60, 0.0 }
 0x179   : > { %v943_v56 = vmul.f32 %v1934_v54, %v905_v62  ;;  %v944_v1 = vmul.f32 %v1936_v10, %v906_v63  ;;  %v595_v42 = vmul.f32 %v1280_v24, %v594_v3  ;;  %v789_v49 = vsel %vm788_vm3, %v1276_v47, %v785_v30 }
 0x17a   : > { %v794_v9 = vsel %vm791_vm2, %v793_v61, %v789_v49  ;;  %v603_v5 = vand.u32 2147483648, %v2170_v60  ;;  %1285 = vrsqrt.f32 %v2207_v31  ;;  %v768_v41 = vmul.f32 %v1282_v39, %v2192_v2  ;;  %v1284_v36 = vpop.eup %1283 }
 0x17b   : > { %v981_v34 = vadd.f32 %v1951_v48, %v943_v56  ;;  %v982_v35 = vadd.f32 %v1955_v57, %v944_v1  ;;  %v596_v6 = vmul.f32 0.5, %v595_v42  ;;  %v909_v11 = vmul.f32 %v794_v9, %v1807_v58 }
 0x17c   : > { %v910_v50 = vmul.f32 %v794_v9, %v1810_v59  ;;  %v776_v43 = vand.u32 2147483647, %v2192_v2  ;;  %vm773_vm8 = vweird.f32 %v1282_v39  ;;  %v778_v47 = vand.u32 2147483648, %v2192_v2 }
 0x17d   : > { %1013 = vst [vmem:[%s2081_s23 + $0x60] sm:$0xff] %v981_v34  ;;  %v573_v28 = vsub.f32 1.5, %v572_v32  ;;  %v597_v15 = vsub.f32 1.5, %v596_v6  ;;  %v947_v45 = vmul.f32 %v1934_v54, %v909_v11  ;;  %v769_v58 = vsub.f32 1.0, %v768_v41 }
 0x17e   : > { %1014 = vst [vmem:[%s2081_s23 + $0x68] sm:$0xff] %v982_v35  ;;  %v948_v19 = vmul.f32 %v1936_v10, %v910_v50  ;;  %v582_v59 = vmul.f32 %v1284_v36, %v2195_v38  ;;  %v2237_v16 = vmul.f32 %v1918_v46, %v434_v0  ;;  %v2240_v8 = vmul.f32 %v1918_v46, %v431_v37 }
 0x17f   : > { %v574_v55 = vmul.f32 %v2189_v52, %v573_v28  ;;  %v598_v51 = vmul.f32 %v1280_v24, %v597_v15  ;;  %v985_v7 = vadd.f32 %v1951_v48, %v947_v45  ;;  %v770_v18 = vmul.f32 %v1282_v39, %v769_v58 }
 0x180   : > { %v986_v40 = vadd.f32 %v1955_v57, %v948_v19  ;;  %v583_v44 = vmul.f32 %v1284_v36, %v582_v59  ;;  %v1286_v20 = vpop.eup %1285  ;;  %vm772_vm9 = vweird.f32 %v2192_v2  ;;  %vm2245_vm10 = vcmp.eq.f32.partialorder %v776_v43, 8.507059e+37 }
 0x181   : > { %v575_v52 = vmul.f32 %v574_v55, %v2162_v27  ;;  %v599_v24 = vmul.f32 %v598_v51, %v2170_v60  ;;  %1017 = vst [vmem:[%s2081_s23 + $0x80] sm:$0xff] %v985_v7  ;;  %v771_v63 = vadd.f32 %v1282_v39, %v770_v18  ;;  %v606_v25 = vmul.f32 %v1286_v20, %v2207_v31  ;;  %vm774_vm11 = vmor %vm772_vm9, %vm773_vm8 }
 0x182   : > { %v584_v26 = vmul.f32 0.5, %v583_v44  ;;  %1287 = vrsqrt.f32 %v2237_v16  ;;  %1018 = vst [vmem:[%s2081_s23 + $0x88] sm:$0xff] %v986_v40  ;;  %v779_v33 = vor.u32 1.1754944e-38, %v778_v47  ;;  %vm588_vm12 = vcmp.eq.f32.partialorder %v2195_v38, inf  ;;  %v437_v40 = vpop.xlane.xlu1 %436 }
 0x183   : > { %v577_v2 = vsel %vm576_vm4, %v2162_v27, %v575_v52  ;;  %v601_v56 = vsel %vm600_vm5, %v2170_v60, %v599_v24  ;;  %1289 = vrsqrt.f32 %v2240_v8  ;;  %v775_v1 = vsel %vm774_vm11, %v1282_v39, %v771_v63 }
 0x184   : > { %v580_v3 = vsel %vm578_vm6, %v579_v17, %v577_v2  ;;  %v604_v30 = vsel %vm602_vm7, %v603_v5, %v601_v56  ;;  %v585_v53 = vsub.f32 1.5, %v584_v26  ;;  %v780_v34 = vsel %vm2245_vm10, %v779_v33, %v775_v1 }
 0x185   : > { %v2269_v35 = vadd.f32 1e-06, %v580_v3  ;;  %v2271_v61 = vadd.f32 1e-06, %v604_v30  ;;  %v907_v42 = vmul.f32 %v780_v34, %v1832_v21  ;;  %v908_v49 = vmul.f32 %v780_v34, %v1835_v4 }
 0x186   : > { %v586_v32 = vmul.f32 %v1284_v36, %v585_v53  ;;  %v607_v39 = vmul.f32 %v1286_v20, %v606_v25  ;;  %vm590_vm13 = vcmp.eq.f32.partialorder %v2195_v38, 0.0  ;;  %v591_v21 = vand.u32 2147483648, %v2195_v38 }
 0x187   : > { %1291 = vrcp.f32 %v2269_v35  ;;  %v945_v60 = vmul.f32 %v1934_v54, %v907_v42  ;;  %v946_v17 = vmul.f32 %v1936_v10, %v908_v49  ;;  %vm612_vm14 = vcmp.eq.f32.partialorder %v2207_v31, inf }
 0x188   : > { %v1288_v27 = vpop.eup %1287  ;;  %1293 = vrcp.f32 %v2271_v61  ;;  %v587_v5 = vmul.f32 %v586_v32, %v2195_v38  ;;  %v608_v11 = vmul.f32 0.5, %v607_v39  ;;  %vm614_vm15 = vcmp.eq.f32.partialorder %v2207_v31, 0.0 }
 0x189   : > { %v2279_v9 = vpop.eup %1289  ;;  %v983_v4 = vadd.f32 %v1951_v48, %v945_v60  ;;  %v984_v6 = vadd.f32 %v1955_v57, %v946_v17  ;;  %v615_v50 = vand.u32 2147483648, %v2207_v31  ;;  %v630_v41 = vmul.f32 %v1288_v27, %v2237_v16 }
 0x18a   : > { %v618_v43 = vmul.f32 %v2279_v9, %v2240_v8  ;;  %vm800_vm0 = vweird.f32 %v2269_v35  ;;  %v589_v0 = vsel %vm588_vm12, %v2195_v38, %v587_v5  ;;  %v609_v37 = vsub.f32 1.5, %v608_v11 }
 0x18b   : > { %1015 = vst [vmem:[%s2081_s23 + $0x70] sm:$0xff] %v983_v4  ;;  %v639_v36 = vand.u32 2147483648, %v2237_v16  ;;  %v804_v28 = vand.u32 2147483647, %v2269_v35  ;;  %v592_v15 = vsel %vm590_vm13, %v591_v21, %v589_v0  ;;  %v631_v45 = vmul.f32 %v1288_v27, %v630_v41 }
 0x18c   : > { %1016 = vst [vmem:[%s2081_s23 + $0x78] sm:$0xff] %v984_v6  ;;  %v619_v19 = vmul.f32 %v2279_v9, %v618_v43  ;;  %v806_v55 = vand.u32 2147483648, %v2269_v35  ;;  %v2304_v51 = vadd.f32 1e-06, %v592_v15  ;;  %v610_v7 = vmul.f32 %v1286_v20, %v609_v37 }
 0x18d   : > { %v1292_v47 = vpop.eup %1291  ;;  %vm828_vm1 = vweird.f32 %v2271_v61  ;;  %v632_v44 = vmul.f32 0.5, %v631_v45  ;;  %v832_v52 = vand.u32 2147483647, %v2271_v61  ;;  %v834_v24 = vand.u32 2147483648, %v2271_v61 }
 0x18e   : > { %v1294_v58 = vpop.eup %1293  ;;  %v796_v59 = vmul.f32 %v1292_v47, %v2269_v35  ;;  %v620_v62 = vmul.f32 0.5, %v619_v19  ;;  %1295 = vrcp.f32 %v2304_v51  ;;  %v611_v26 = vmul.f32 %v610_v7, %v2207_v31 }
 0x18f   : > { %v824_v18 = vmul.f32 %v1294_v58, %v2271_v61  ;;  %v633_v25 = vsub.f32 1.5, %v632_v44  ;;  %v2313_v20 = vmul.f32 %v1918_v46, %v437_v40  ;;  %vm801_vm2 = vweird.f32 %v1292_v47 }
 0x190   : > { %v797_v38 = vsub.f32 1.0, %v796_v59  ;;  %vm2315_vm3 = vcmp.eq.f32.partialorder %v804_v28, 8.507059e+37  ;;  %vm636_vm4 = vcmp.eq.f32.partialorder %v2237_v16, inf  ;;  %v621_v56 = vsub.f32 1.5, %v620_v62  ;;  %vm802_vm8 = vmor %vm800_vm0, %vm801_vm2 }
 0x191   : > { %v825_v63 = vsub.f32 1.0, %v824_v18  ;;  %vm829_vm5 = vweird.f32 %v1294_v58  ;;  %v613_v3 = vsel %vm612_vm14, %v2207_v31, %v611_v26  ;;  %v634_v30 = vmul.f32 %v1288_v27, %v633_v25 }
 0x192   : > { %v798_v33 = vmul.f32 %v1292_v47, %v797_v38  ;;  %v807_v34 = vor.u32 1.1754944e-38, %v806_v55  ;;  %vm2323_vm6 = vcmp.eq.f32.partialorder %v832_v52, 8.507059e+37  ;;  %v616_v42 = vsel %vm614_vm15, %v615_v50, %v613_v3  ;;  %vm830_vm10 = vmor %vm828_vm1, %vm829_vm5 }
 0x193   : > { %v826_v1 = vmul.f32 %v1294_v58, %v825_v63  ;;  %vm638_vm7 = vcmp.eq.f32.partialorder %v2237_v16, 0.0  ;;  %v835_v32 = vor.u32 1.1754944e-38, %v834_v24  ;;  %v2332_v39 = vadd.f32 1e-06, %v616_v42 }
 0x194   : > { %v799_v53 = vadd.f32 %v1292_v47, %v798_v33  ;;  %vm624_vm9 = vcmp.eq.f32.partialorder %v2240_v8, inf  ;;  %1297 = vrsqrt.f32 %v2313_v20  ;;  %v1296_v27 = vpop.eup %1295  ;;  %v818_v31 = vand.u32 2147483647, %v2304_v51 }
 0x195   : > { %v827_v49 = vadd.f32 %v1294_v58, %v826_v1  ;;  %v622_v17 = vmul.f32 %v2279_v9, %v621_v56  ;;  %vm626_vm11 = vcmp.eq.f32.partialorder %v2240_v8, 0.0  ;;  %v810_v4 = vmul.f32 %v1296_v27, %v2304_v51 }
 0x196   : > { %v803_v60 = vsel %vm802_vm8, %v1292_v47, %v799_v53  ;;  %v635_v6 = vmul.f32 %v634_v30, %v2237_v16  ;;  %1299 = vrcp.f32 %v2332_v39  ;;  %v820_v43 = vand.u32 2147483648, %v2304_v51 }
 0x197   : > { %v808_v35 = vsel %vm2315_vm3, %v807_v34, %v803_v60  ;;  %v831_v21 = vsel %vm830_vm10, %v1294_v58, %v827_v49  ;;  %v811_v41 = vsub.f32 1.0, %v810_v4  ;;  %vm815_vm12 = vweird.f32 %v1296_v27 }
 0x198   : > { %v911_v5 = vmul.f32 %v808_v35, %v1851_v12  ;;  %v912_v11 = vmul.f32 %v808_v35, %v1854_v13  ;;  %v836_v61 = vsel %vm2323_vm6, %v835_v32, %v831_v21  ;;  %v623_v12 = vmul.f32 %v622_v17, %v2240_v8  ;;  %v2528_v17 = vld [vmem:[#allocation15_spill] sm:$0xff] }
 0x199   : > { %v915_v9 = vmul.f32 %v836_v61, %v1841_v22  ;;  %v916_v50 = vmul.f32 %v836_v61, %v1844_v23  ;;  %v812_v15 = vmul.f32 %v1296_v27, %v811_v41  ;;  %v637_v22 = vsel %vm636_vm4, %v2237_v16, %v635_v6 }
 0x19a   : > { %v949_v0 = vmul.f32 %v1934_v54, %v911_v5  ;;  %v950_v37 = vmul.f32 %v1936_v10, %v912_v11  ;;  %v1298_v13 = vpop.eup %1297  ;;  %vm814_vm13 = vweird.f32 %v2304_v51  ;;  %v627_v19 = vand.u32 2147483648, %v2240_v8 }
 0x19b   : > { %v953_v47 = vmul.f32 %v1934_v54, %v915_v9  ;;  %v954_v28 = vmul.f32 %v1936_v10, %v916_v50  ;;  %v813_v55 = vadd.f32 %v1296_v27, %v812_v15  ;;  %v640_v7 = vsel %vm638_vm7, %v639_v36, %v637_v22  ;;  %vm816_vm14 = vmor %vm814_vm13, %vm815_vm12 }
 0x19c   : > { %v987_v23 = vadd.f32 %v1951_v48, %v949_v0  ;;  %v988_v45 = vadd.f32 %v1955_v57, %v950_v37  ;;  %v1300_v40 = vpop.eup %1299  ;;  %v821_v18 = vor.u32 1.1754944e-38, %v820_v43  ;;  %v667_v51 = vadd.f32 1e-06, %v640_v7  ;;  %v2531_v7 = vld [vmem:[#allocation12_spill] sm:$0xff] }
 0x19d   : > { %v991_v58 = vadd.f32 %v1951_v48, %v953_v47  ;;  %v992_v59 = vadd.f32 %v1955_v57, %v954_v28  ;;  %v625_v44 = vsel %vm624_vm9, %v2240_v8, %v623_v12  ;;  %v642_v62 = vmul.f32 %v1298_v13, %v2313_v20 }
 0x19e   : > { %1019 = vst [vmem:[%s2081_s23 + $0x90] sm:$0xff] %v987_v23  ;;  %v817_v38 = vsel %vm816_vm14, %v1296_v27, %v813_v55  ;;  %vm819_vm15 = vcmp.eq.f32.partialorder %v818_v31, 8.507059e+37  ;;  %v838_v52 = vmul.f32 %v1300_v40, %v2332_v39  ;;  %v628_v16 = vsel %vm626_vm11, %v627_v19, %v625_v44 }
 0x19f   : > { %1020 = vst [vmem:[%s2081_s23 + $0x98] sm:$0xff] %v988_v45  ;;  %v822_v36 = vsel %vm819_vm15, %v821_v18, %v817_v38  ;;  %1301 = vrcp.f32 %v667_v51  ;;  %v846_v25 = vand.u32 2147483647, %v2332_v39  ;;  %v848_v33 = vand.u32 2147483648, %v2332_v39  ;;  %v2532_v18 = vld [vmem:[#allocation13_spill] sm:$0xff] }
 0x1a0   : > { %1023 = vst [vmem:[%s2081_s23 + $0xb0] sm:$0xff] %v991_v58  ;;  %v913_v24 = vmul.f32 %v822_v36, %v1861_v14  ;;  %v914_v63 = vmul.f32 %v822_v36, %v1868_v29  ;;  %v839_v26 = vsub.f32 1.0, %v838_v52  ;;  %v2388_v2 = vadd.f32 1e-06, %v628_v16 }
 0x1a1   : > { %1024 = vst [vmem:[%s2081_s23 + $0xb8] sm:$0xff] %v992_v59  ;;  %v643_v56 = vmul.f32 %v1298_v13, %v642_v62  ;;  %vm843_vm0 = vweird.f32 %v1300_v40  ;;  %vm842_vm1 = vweird.f32 %v2332_v39  ;;  %v849_v46 = vor.u32 1.1754944e-38, %v848_v33  ;;  %v2527_v39 = vld [vmem:[#allocation14_spill] sm:$0xff] }
 0x1a2   : > { %v951_v8 = vmul.f32 %v1934_v54, %v913_v24  ;;  %v952_v1 = vmul.f32 %v1936_v10, %v914_v63  ;;  %v840_v3 = vmul.f32 %v1300_v40, %v839_v26  ;;  %1303 = vrcp.f32 %v2388_v2  ;;  %vm844_vm2 = vmor %vm842_vm1, %vm843_vm0  ;;  %v2533_v63 = vld [vmem:[#allocation16_spill] sm:$0xff] }
 0x1a3   : > { %v644_v53 = vmul.f32 0.5, %v643_v56  ;;  %vm847_vm3 = vcmp.eq.f32.partialorder %v846_v25, 8.507059e+37  ;;  %v874_v60 = vand.u32 2147483647, %v667_v51  ;;  %v876_v5 = vand.u32 2147483648, %v667_v51  ;;  %v2534_v25 = vld [vmem:[#allocation17_spill] sm:$0xff] }
 0x1a4   : > { %v989_v14 = vadd.f32 %v1951_v48, %v951_v8  ;;  %v990_v29 = vadd.f32 %v1955_v57, %v952_v1  ;;  %v841_v30 = vadd.f32 %v1300_v40, %v840_v3  ;;  %vm648_vm5 = vcmp.eq.f32.partialorder %v2313_v20, inf }
 0x1a5   : > { %v1302_v34 = vpop.eup %1301  ;;  %v645_v32 = vsub.f32 1.5, %v644_v53  ;;  %vm650_vm6 = vcmp.eq.f32.partialorder %v2313_v20, 0.0  ;;  %vm870_vm7 = vweird.f32 %v667_v51  ;;  %vm2405_vm8 = vcmp.eq.f32.partialorder %v874_v60, 8.507059e+37 }
 0x1a6   : > { %1021 = vst [vmem:[%s2081_s23 + $0xa0] sm:$0xff] %v989_v14  ;;  %v845_v42 = vsel %vm844_vm2, %v1300_v40, %v841_v30  ;;  %v866_v49 = vmul.f32 %v1302_v34, %v667_v51  ;;  %vm871_vm4 = vweird.f32 %v1302_v34  ;;  %v651_v0 = vand.u32 2147483648, %v2313_v20 }
 0x1a7   : > { %1022 = vst [vmem:[%s2081_s23 + $0xa8] sm:$0xff] %v990_v29  ;;  %v850_v27 = vsel %vm847_vm3, %v849_v46, %v845_v42  ;;  %v646_v4 = vmul.f32 %v1298_v13, %v645_v32  ;;  %vm872_vm9 = vmor %vm870_vm7, %vm871_vm4  ;;  %v877_v28 = vor.u32 1.1754944e-38, %v876_v5  ;;  %v860_v15 = vand.u32 2147483647, %v2388_v2 }
 0x1a8   : > { %v917_v31 = vmul.f32 %v850_v27, %v2527_v39  ;;  %v918_v35 = vmul.f32 %v850_v27, %v2528_v17  ;;  %v867_v21 = vsub.f32 1.0, %v866_v49  ;;  %v1304_v6 = vpop.eup %1303  ;;  %v862_v22 = vand.u32 2147483648, %v2388_v2  ;;  %v2535_v27 = vld [vmem:[#allocation18_spill] sm:$0xff]  ;;  %v2536_v39 = vld [vmem:[#allocation19_spill] sm:$0xff] }
 0x1a9   : > { %v852_v50 = vmul.f32 %v1304_v6, %v2388_v2  ;;  %v647_v43 = vmul.f32 %v646_v4, %v2313_v20  ;;  %vm857_vm10 = vweird.f32 %v1304_v6  ;;  %vm856_vm11 = vweird.f32 %v2388_v2 }
 0x1aa   : > { %v955_v11 = vmul.f32 %v1934_v54, %v917_v31  ;;  %v956_v61 = vmul.f32 %v1936_v10, %v918_v35  ;;  %v868_v9 = vmul.f32 %v1302_v34, %v867_v21  ;;  %vm858_vm12 = vmor %vm856_vm11, %vm857_vm10  ;;  %v863_v62 = vor.u32 1.1754944e-38, %v862_v22 }
 0x1ab   : > { %v853_v47 = vsub.f32 1.0, %v852_v50  ;;  %v649_v23 = vsel %vm648_vm5, %v2313_v20, %v647_v43  ;;  %vm861_vm13 = vcmp.eq.f32.partialorder %v860_v15, 8.507059e+37 }
 0x1ac   : > { %v993_v37 = vadd.f32 %v1951_v48, %v955_v11  ;;  %v994_v12 = vadd.f32 %v1955_v57, %v956_v61  ;;  %v869_v13 = vadd.f32 %v1302_v34, %v868_v9  ;;  %v652_v58 = vsel %vm650_vm6, %v651_v0, %v649_v23 }
 0x1ad   : > { %v854_v19 = vmul.f32 %v1304_v6, %v853_v47  ;;  %v668_v55 = vadd.f32 1e-06, %v652_v58 }
 0x1ae   : > { %1025 = vst [vmem:[%s2081_s23 + $0xc0] sm:$0xff] %v993_v37  ;;  %v873_v45 = vsel %vm872_vm9, %v1302_v34, %v869_v13 }
 0x1af   : > { %1026 = vst [vmem:[%s2081_s23 + $0xc8] sm:$0xff] %v994_v12  ;;  %v878_v59 = vsel %vm2405_vm8, %v877_v28, %v873_v45  ;;  %v855_v44 = vadd.f32 %v1304_v6, %v854_v19  ;;  %1305 = vrcp.f32 %v668_v55  ;;  %v890_v30 = vand.u32 2147483648, %v668_v55 }
 0x1b0   : > { %v921_v40 = vmul.f32 %v878_v59, %v2531_v7  ;;  %v922_v51 = vmul.f32 %v878_v59, %v2532_v18  ;;  %v888_v34 = vand.u32 2147483647, %v668_v55  ;;  %vm884_vm15 = vweird.f32 %v668_v55 }
 0x1b1   : > { %v859_v52 = vsel %vm858_vm12, %v1304_v6, %v855_v44  ;;  %v891_v42 = vor.u32 1.1754944e-38, %v890_v30 }
 0x1b2   : > { %v959_v20 = vmul.f32 %v1934_v54, %v921_v40  ;;  %v960_v38 = vmul.f32 %v1936_v10, %v922_v51  ;;  %v864_v16 = vsel %vm861_vm13, %v863_v62, %v859_v52  ;;  %vm889_vm1 = vcmp.eq.f32.partialorder %v888_v34, 8.507059e+37 }
 0x1b3   : > { %v919_v26 = vmul.f32 %v864_v16, %v2533_v63  ;;  %v920_v33 = vmul.f32 %v864_v16, %v2534_v25 }
 0x1b4   : > { %v997_v36 = vadd.f32 %v1951_v48, %v959_v20  ;;  %v998_v24 = vadd.f32 %v1955_v57, %v960_v38 }
 0x1b5   : > { %v957_v2 = vmul.f32 %v1934_v54, %v919_v26  ;;  %v958_v56 = vmul.f32 %v1936_v10, %v920_v33  ;;  %v1306_v8 = vpop.eup %1305 }
 0x1b6   : > { %1029 = vst [vmem:[%s2081_s23 + $0xe0] sm:$0xff] %v997_v36  ;;  %v880_v14 = vmul.f32 %v1306_v8, %v668_v55  ;;  %vm885_vm14 = vweird.f32 %v1306_v8 }
 0x1b7   : > { %1030 = vst [vmem:[%s2081_s23 + $0xe8] sm:$0xff] %v998_v24  ;;  %v995_v1 = vadd.f32 %v1951_v48, %v957_v2  ;;  %v996_v3 = vadd.f32 %v1955_v57, %v958_v56  ;;  %vm886_vm0 = vmor %vm884_vm15, %vm885_vm14 }
 0x1b8   : > { %v881_v29 = vsub.f32 1.0, %v880_v14 }
 0x1b9   : > { %1027 = vst [vmem:[%s2081_s23 + $0xd0] sm:$0xff] %v995_v1 }
 0x1ba   : > { %1028 = vst [vmem:[%s2081_s23 + $0xd8] sm:$0xff] %v996_v3  ;;  %v882_v53 = vmul.f32 %v1306_v8, %v881_v29 }
 0x1bc   : > { %v883_v46 = vadd.f32 %v1306_v8, %v882_v53 }
 0x1be   : > { %v887_v49 = vsel %vm886_vm0, %v1306_v8, %v883_v46 }
 0x1bf   : > { %v892_v32 = vsel %vm889_vm1, %v891_v42, %v887_v49 }
 0x1c0   : > { %v923_v60 = vmul.f32 %v892_v32, %v2535_v27  ;;  %v924_v31 = vmul.f32 %v892_v32, %v2536_v39 }
 0x1c2   : > { %v961_v17 = vmul.f32 %v1934_v54, %v923_v60  ;;  %v962_v35 = vmul.f32 %v1936_v10, %v924_v31 }
 0x1c4   : > { %v999_v21 = vadd.f32 %v1951_v48, %v961_v17  ;;  %v1000_v4 = vadd.f32 %v1955_v57, %v962_v35 }
 0x1c6   : > { %1031 = vst [vmem:[%s2081_s23 + $0xf0] sm:$0xff] %v999_v21 }
 0x1c7   : > { %1032 = vst [vmem:[%s2081_s23 + $0xf8] sm:$0xff] %v1000_v4 }
 0x1c8   : > { %1424 = shalt.err (!%p1421_p8)
}
 0x1c9   : > { %s1475_s27 = smov 256   ;;  %s1476_s28 = smov 16  }
 0x1ca   : > { %1176 = dma.vmem_to_hbm [thread:$0]  (%p1549_p11), %s1048_s16, 4096, %s1050_s22, %s1034_s6, %s1475_s27, %s1475_s27, %s1476_s28  }
 0x1cb PF: > { %p1198_p9 = scmp.ge.s32.totalorder %s1467_s15, 2  ;;  %s1064_s30 = sand.u32 1, %s1455_s12  }
 0x1cc   : > { %s1065_s4 = scalar_lea.sflag [#allocation4], %s1064_s30 }
 0x1cd   : > { %p1190_p10 = pnand %p1198_p9, %p1553_p12 }
 0x1cf   : > { %p1191_p1 = pneg %p1190_p10 }
 0x1d1   : > { %1450 = dma.done.wait (%p1191_p1), %s1065_s4, 4096  }
 0x1d2   : > { %1452 = vsyncadd (%p1191_p1), %s1065_s4, 4294963200  ;;  %p17_p0 = scmp.ge.s32.totalorder %s1522_s18, 6   ;;  %s2537_s12 = smov %s1459_s13 }
 0x1d3   : > { %s2538_s13 = smov %s1463_s14  ;;  %s2539_s14 = smov %s1534_s21 }
 0x1d4   : > { %s2540_s15 = smov %s1522_s18  ;;  %19 = sbr.rel (!%p17_p0) target bundleno = 6 (0x6), region = 85 }
 0x1d9   :  { %1071 = vsyncpa [#allocation3], 1 }
 0x1da   :  { %1073 = vsyncpa [#allocation3 + $0x1], 1 }
 0x1db   :  { %1074 = vsyncpa [#allocation6], 1 }
 0x1dc   :  { %1075 = vsyncpa [#allocation4], 1 }
 0x1dd   :  { %1077 = vsyncpa [#allocation4 + $0x1], 1 }

</bundles_post_ra>
